<compile_context>
chip_gen: v6e
topology: v6e:2x2x1
jax: 0.10.0
libtpu: 0.0.40
codegen_flags: <defaults>
</compile_context>

<pallas_src>
import functools

import numpy as np
import jax
import jax.numpy as jnp
from jax import lax
from jax.experimental import pallas as pl
from jax.experimental.pallas import tpu as pltpu


def _round_up(x, m):
    return (x + m - 1) // m * m


def _vmem_capacity_bytes():
    """Physical VMEM per TensorCore; conservative default if the query fails."""
    try:
        return int(pltpu.get_tpu_info().vmem_capacity_bytes)
    except Exception:
        return 64 * 1024 * 1024                     # assume the smallest part (v7x)


def _budgets():
    """(h-tile budget, vmem_limit cap, min pipeline steps) derived per chip."""
    cap = _vmem_capacity_bytes()
    if cap <= 64 * 1024 * 1024:                     # v7x-class: 64 MiB / TC, 2 TCs
        return 16 * 1024 * 1024, 40 * 1024 * 1024, 8
    # v5e / v6e: 128 MiB VMEM, 1 TC -> larger tiles, >= 4 steps for pipelining
    return 56 * 1024 * 1024, 96 * 1024 * 1024, 4


def _choose_batch_tile(B, row_bytes, budget_bytes, min_steps):
    if B <= 8:
        return B                                    # one full block (dims == array dims)
    cap_vmem = budget_bytes // max(2 * row_bytes, 1)        # 2x: double-buffered pipeline
    cap_vmem = max(8, (cap_vmem // 8) * 8)
    cap_steps = max(8, (pl.cdiv(B, min_steps) // 8) * 8)    # keep >= min_steps grid steps
    return min(cap_vmem, cap_steps, 2048)


def _vmem_limit_bytes(TB, L, H, O_pad, itemsize, flat, cap):
    tb_p = _round_up(TB, 8)
    h_lanes = _round_up(L * H, 128) if flat else L * _round_up(H, 128)
    h_blk = 2 * tb_p * h_lanes * itemsize                   # double-buffered h tile
    out_blk = 2 * tb_p * _round_up(O_pad, 128) * 4          # double-buffered out tile
    if flat:
        q_res = _round_up(L * H, 8) * 128 * itemsize        # [L*H, L], lane-padded
    else:
        q_res = 8 * _round_up(H, 128) * itemsize            # [1, H]
    w_res = _round_up(H, 8) * _round_up(O_pad, 128) * itemsize
    const = 2 * (q_res + w_res)                             # worst case: still double-buffered
    temps = 12 * tb_p * 128 * 4                             # lane-padded (TB,1)/(TB,L) f32 temps
    pooled = tb_p * _round_up(H, 128) * 4
    total = h_blk + out_blk + const + temps + pooled + (2 << 20)   # + internal scratch
    return int(min(max(total, 32 * 1024 * 1024), cap))


def _block_diag_q(q, L, H, dtype):
    """[1, H] -> [L*H, L]: column l holds q in rows l*H:(l+1)*H, zeros elsewhere,
    so h_flat @ qb computes all L per-layer scores in one MXU call."""
    eye = jnp.eye(L, dtype=dtype)                                    # [L, L]
    return (eye[:, None, :] * q.reshape(1, H, 1).astype(dtype)).reshape(L * H, L)


# ----------------------------------------------------------------------------- kernels

def _attn_pool_flat_kernel(h_ref, qb_ref, w_ref, o_ref, *, num_layers, hidden_size,
                           approx_recip):
    """Fast path (H % 128 == 0).
    h_ref: [TB, L*H] (raw PyTorch-.view layout), qb_ref: [L*H, L] block-diag q,
    w_ref: [H, O_pad], o_ref: [TB, O_pad]."""
    L, H = num_layers, hidden_size
    h = h_ref[...]

    # fused scores on the MXU: scores[b, l] = q . h[b, l, :]
    scores = jnp.dot(h, qb_ref[...], preferred_element_type=jnp.float32)   # [TB, L]

    # numerically stable softmax over the (lane-axis, width L) layer dimension
    m = jnp.max(scores, axis=-1, keepdims=True)
    e = jnp.exp(scores - m)                                                 # EUP
    denom = jnp.sum(e, axis=-1, keepdims=True)
    inv = pl.reciprocal(denom, approx=approx_recip)                         # EUP
    wgt = (e * inv).astype(h.dtype)                                         # [TB, L]

    # pooled[b, :] = sum_l wgt[b, l] * h[b, l*H:(l+1)*H]   (VPU FMAs, input dtype)
    pooled = wgt[:, 0:1] * h[:, 0:H]
    for l in range(1, L):
        pooled = pooled + wgt[:, l:l + 1] * h[:, l * H:(l + 1) * H]

    # output projection on the MXU (lane-dense O_pad columns)
    o_ref[...] = jnp.dot(pooled, w_ref[...],
                         preferred_element_type=jnp.float32).astype(o_ref.dtype)


def _attn_pool_lbh_kernel(h_ref, q_ref, w_ref, o_ref, *, approx_recip):
    """Compat path (H % 128 != 0): layer-major layout, dense (TB, H) per-layer slabs.
    h_ref: [L, TB, H], q_ref: [1, H], w_ref: [H, O_pad], o_ref: [TB, O_pad]."""
    L = h_ref.shape[0]
    q = q_ref[...]
    contract_h = (((1,), (1,)), ((), ()))                   # contract the H axes

    hs = [h_ref[l] for l in range(L)]
    scores = [lax.dot_general(hs[l], q, contract_h,
                              preferred_element_type=jnp.float32)           # [TB, 1]
              for l in range(L)]

    m = scores[0]
    for l in range(1, L):
        m = jnp.maximum(m, scores[l])
    exps = [jnp.exp(s - m) for s in scores]                                 # EUP
    denom = exps[0]
    for l in range(1, L):
        denom = denom + exps[l]
    inv = pl.reciprocal(denom, approx=approx_recip)                         # EUP

    pooled = (exps[0] * inv).astype(hs[0].dtype) * hs[0]
    for l in range(1, L):
        pooled = pooled + (exps[l] * inv).astype(hs[l].dtype) * hs[l]

    o_ref[...] = jnp.dot(pooled, w_ref[...],
                         preferred_element_type=jnp.float32).astype(o_ref.dtype)


# ----------------------------------------------------------------------------- wrapper

_BUFFERED_CONST_OK = True   # flipped off if this JAX build rejects pl.Buffered(1)


def _const_spec(block_shape, single_buffer):
    """Grid-invariant operand: constant index_map (fetched once, VMEM-resident);
    request a single pipeline buffer when supported (halves its footprint)."""
    if single_buffer:
        return pl.BlockSpec(block_shape, lambda i: (0, 0),
                            pipeline_mode=pl.Buffered(1))
    return pl.BlockSpec(block_shape, lambda i: (0, 0))


def _run_pallas(kernel, grid, in_specs_fn, out_spec, out_shape, vmem_limit, args):
    global _BUFFERED_CONST_OK
    attempts = (True, False) if _BUFFERED_CONST_OK else (False,)
    err = None
    for single_buffer in attempts:
        try:
            fn = pl.pallas_call(
                kernel,
                out_shape=out_shape,
                grid_spec=pl.GridSpec(
                    grid=grid,
                    in_specs=in_specs_fn(single_buffer),
                    out_specs=out_spec,
                ),
                compiler_params=pltpu.CompilerParams(
                    dimension_semantics=("parallel",),      # independent batch tiles
                    vmem_limit_bytes=vmem_limit,
                ),
            )
            return fn(*args)
        except Exception as e:                              # fall back w/o Buffered(1)
            err = e
            if not single_buffer:
                raise
            _BUFFERED_CONST_OK = False
    raise err


def attention_pooling_pallas(h_flat, q, w_h, num_layers, hidden_size,
                             approx_reciprocal=True):
    """h_flat: [B, L*H] raw .view layout, q: [1, H], w_h: [H, O] -> [B, O] float32."""
    L, H = num_layers, hidden_size
    B = h_flat.shape[0]
    O = w_h.shape[1]
    dtype = h_flat.dtype
    itemsize = jnp.dtype(dtype).itemsize

    # keep the MXU in the activations' native (possibly bf16) path
    q = q.astype(dtype)
    w = w_h.astype(dtype)
    O_pad = _round_up(O, 128)
    if O_pad != O:                                   # lane-dense output tile: no vst.msk
        w = jnp.pad(w, ((0, 0), (0, O_pad - O)))

    budget, vmem_cap, min_steps = _budgets()
    TB = _choose_batch_tile(B, L * H * itemsize, budget, min_steps)
    grid = (pl.cdiv(B, TB),)

    flat_ok = (H % 128 == 0)
    vmem_limit = _vmem_limit_bytes(TB, L, H, O_pad, itemsize, flat_ok, vmem_cap)

    out_spec = pl.BlockSpec((TB, O_pad), lambda i: (i, 0))
    out_shape = jax.ShapeDtypeStruct((B, O_pad), jnp.float32)

    if flat_ok:
        # fast path: no wrapper transpose, lane-aligned static slices inside the kernel
        qb = _block_diag_q(q, L, H, dtype)
        kernel = functools.partial(_attn_pool_flat_kernel, num_layers=L,
                                   hidden_size=H, approx_recip=approx_reciprocal)

        def in_specs(single_buffer):
            return [
                pl.BlockSpec((TB, L * H), lambda i: (i, 0)),   # pipelined h tiles
                _const_spec((L * H, L), single_buffer),         # block-diag q
                _const_spec((H, O_pad), single_buffer),         # projection weights
            ]
        args = (h_flat, qb, w)
    else:
        # compat path: layer-major layout (one transpose) so per-layer slabs are dense
        h_lbh = jnp.transpose(h_flat.reshape(B, L, H), (1, 0, 2))
        kernel = functools.partial(_attn_pool_lbh_kernel,
                                   approx_recip=approx_reciprocal)

        def in_specs(single_buffer):
            return [
                pl.BlockSpec((L, TB, H), lambda i: (0, i, 0)),
                _const_spec((1, H), single_buffer),
                _const_spec((H, O_pad), single_buffer),
            ]
        args = (h_lbh, q, w)

    out = _run_pallas(kernel, grid, in_specs, out_spec, out_shape, vmem_limit, args)
    return out[:, :O] if O_pad != O else out


def attention_pooling_forward(all_hidden_states, q, w_h, num_layers, hidden_size,
                              approx_reciprocal=True):
    """Replicates AttentionPooling.forward (eval mode)."""
    L, H = num_layers, hidden_size
    # stack([x[:, 0] for ...], dim=-1): [batch, hidden, L]
    cls_per_layer = [all_hidden_states[l][:, 0] for l in range(L)]
    stacked = jnp.stack(cls_per_layer, axis=-1)
    # PyTorch .view(-1, L, H) is a raw row-major reinterpretation of those bytes
    # (it interleaves hidden/layer dims); reproduced exactly.  Keep the byte-identical
    # flat 2-D view [B, L*H] so h is streamed once, without a wrapper transpose.
    B = stacked.size // (L * H)
    h_flat = stacked.reshape(B, L * H)
    out = attention_pooling_pallas(h_flat, q, w_h, L, H,
                                   approx_reciprocal=approx_reciprocal)
    # Dropout(0.1) is identity in eval mode.
    # TODO(synk): training-mode dropout not implemented (eval semantics = identity).
    return out


def _reference(all_hidden_states, q, w_h, num_layers, hidden_size):
    """Pure-JAX reference mirroring the PyTorch module (eval mode)."""
    cls_per_layer = [all_hidden_states[l][:, 0] for l in range(num_layers)]
    h = jnp.stack(cls_per_layer, axis=-1).reshape(-1, num_layers, hidden_size)
    s = jnp.einsum('h,blh->bl', q[0], h)
    v = jax.nn.softmax(s, axis=-1)
    pooled = jnp.einsum('bl,blh->bh', v, h)
    return pooled @ w_h


if __name__ == "__main__":
    root = jax.random.PRNGKey(0)
    key1, key2 = jax.random.split(root, 2)

    def make_inputs(key, num_layers, hidden_size, out_dim, batch, seq):
        k_q, k_w, k_h = jax.random.split(key, 3)
        # Parameters mirroring np.random.normal(0, 0.1, ...)
        q = (0.1 * jax.random.normal(k_q, (1, hidden_size))).astype(jnp.float32)
        w_h = (0.1 * jax.random.normal(k_w, (hidden_size, out_dim))).astype(jnp.float32)
        hk = jax.random.split(k_h, num_layers)
        hs = [jax.random.normal(hk[i], (batch, seq, hidden_size)).astype(jnp.float32)
              for i in range(num_layers)]
        return q, w_h, hs

    # --- case 1: module's nominal small shapes (H % 128 != 0 -> layer-major compat path)
    L1, H1, O1, B1, S1 = 4, 32, 8, 2, 8
    q1, w1, hs1 = make_inputs(key1, L1, H1, O1, B1, S1)
    out1 = attention_pooling_forward(hs1, q1, w1, L1, H1)
    jax.block_until_ready(out1)
    assert out1.shape == (B1, O1), out1.shape
    ref1 = _reference(hs1, q1, w1, L1, H1)
    np.testing.assert_allclose(np.asarray(out1), np.asarray(ref1),
                               rtol=2e-2, atol=2e-3)

    # --- case 2: lane-aligned hidden size (H % 128 == 0 -> flat fast path, >1 grid step)
    L2, H2, O2, B2, S2 = 4, 128, 8, 16, 4
    q2, w2, hs2 = make_inputs(key2, L2, H2, O2, B2, S2)
    out2 = attention_pooling_forward(hs2, q2, w2, L2, H2)
    jax.block_until_ready(out2)
    assert out2.shape == (B2, O2), out2.shape
    ref2 = _reference(hs2, q2, w2, L2, H2)
    np.testing.assert_allclose(np.asarray(out2), np.asarray(ref2),
                               rtol=2e-2, atol=2e-3)

    print("KERNEL_OK")
</pallas_src>

<mosaic_0001>
module attributes {stable_mosaic.version = 11 : i64} {
  func.func @_attn_pool_lbh_kernel(%arg0: i32, %arg1: memref<4x2x32xf32, #tpu.memory_space<vmem>>, %arg2: memref<1x32xf32, #tpu.memory_space<vmem>>, %arg3: memref<32x128xf32, #tpu.memory_space<vmem>>, %arg4: memref<2x128xf32, #tpu.memory_space<vmem>>) attributes {dimension_semantics = [#tpu.dimension_semantics<parallel>], iteration_bounds = array<i64: 1>, scalar_prefetch = 0 : i64, scratch_operands = 0 : i64, tpu.core_type = #tpu.core_type<tc>, window_params = [{transform_indices = @transform_0, window_bounds = array<i64: 4, 2, 32>}, {pipeline_mode = #tpu.pipeline_mode<synchronous>, transform_indices = @transform_1, window_bounds = array<i64: 1, 32>}, {pipeline_mode = #tpu.pipeline_mode<synchronous>, transform_indices = @transform_2, window_bounds = array<i64: 32, 128>}, {transform_indices = @transform_3, window_bounds = array<i64: 2, 128>}]} {
    %c0 = arith.constant 0 : index
    %c0_0 = arith.constant 0 : index
    %0 = vector.load %arg2[%c0, %c0_0] : memref<1x32xf32, #tpu.memory_space<vmem>>, vector<1x32xf32>
    %c0_1 = arith.constant 0 : index
    %c0_2 = arith.constant 0 : index
    %c0_3 = arith.constant 0 : index
    %1 = vector.load %arg1[%c0_1, %c0_2, %c0_3] : memref<4x2x32xf32, #tpu.memory_space<vmem>>, vector<1x2x32xf32>
    %2 = vector.shape_cast %1 : vector<1x2x32xf32> to vector<2x32xf32>
    %c1 = arith.constant 1 : index
    %c0_4 = arith.constant 0 : index
    %c0_5 = arith.constant 0 : index
    %3 = vector.load %arg1[%c1, %c0_4, %c0_5] : memref<4x2x32xf32, #tpu.memory_space<vmem>>, vector<1x2x32xf32>
    %4 = vector.shape_cast %3 : vector<1x2x32xf32> to vector<2x32xf32>
    %c2 = arith.constant 2 : index
    %c0_6 = arith.constant 0 : index
    %c0_7 = arith.constant 0 : index
    %5 = vector.load %arg1[%c2, %c0_6, %c0_7] : memref<4x2x32xf32, #tpu.memory_space<vmem>>, vector<1x2x32xf32>
    %6 = vector.shape_cast %5 : vector<1x2x32xf32> to vector<2x32xf32>
    %c3 = arith.constant 3 : index
    %c0_8 = arith.constant 0 : index
    %c0_9 = arith.constant 0 : index
    %7 = vector.load %arg1[%c3, %c0_8, %c0_9] : memref<4x2x32xf32, #tpu.memory_space<vmem>>, vector<1x2x32xf32>
    %8 = vector.shape_cast %7 : vector<1x2x32xf32> to vector<2x32xf32>
    %cst = arith.constant dense<0.000000e+00> : vector<2x1xf32>
    %9 = tpu.matmul %2, %0, %cst {dimension_numbers = #tpu.dot_dimension_numbers<[1], [1], [0], [0], [0, 0, 1, 0], [], []>} : vector<2x32xf32>, vector<1x32xf32>, vector<2x1xf32> -> vector<2x1xf32>
    %cst_10 = arith.constant dense<0.000000e+00> : vector<2x1xf32>
    %10 = tpu.matmul %4, %0, %cst_10 {dimension_numbers = #tpu.dot_dimension_numbers<[1], [1], [0], [0], [0, 0, 1, 0], [], []>} : vector<2x32xf32>, vector<1x32xf32>, vector<2x1xf32> -> vector<2x1xf32>
    %cst_11 = arith.constant dense<0.000000e+00> : vector<2x1xf32>
    %11 = tpu.matmul %6, %0, %cst_11 {dimension_numbers = #tpu.dot_dimension_numbers<[1], [1], [0], [0], [0, 0, 1, 0], [], []>} : vector<2x32xf32>, vector<1x32xf32>, vector<2x1xf32> -> vector<2x1xf32>
    %cst_12 = arith.constant dense<0.000000e+00> : vector<2x1xf32>
    %12 = tpu.matmul %8, %0, %cst_12 {dimension_numbers = #tpu.dot_dimension_numbers<[1], [1], [0], [0], [0, 0, 1, 0], [], []>} : vector<2x32xf32>, vector<1x32xf32>, vector<2x1xf32> -> vector<2x1xf32>
    %13 = arith.maximumf %9, %10 : vector<2x1xf32>
    %14 = arith.maximumf %13, %11 : vector<2x1xf32>
    %15 = arith.maximumf %14, %12 : vector<2x1xf32>
    %16 = arith.subf %9, %15 : vector<2x1xf32>
    %17 = math.exp %16 : vector<2x1xf32>
    %18 = arith.subf %10, %15 : vector<2x1xf32>
    %19 = math.exp %18 : vector<2x1xf32>
    %20 = arith.subf %11, %15 : vector<2x1xf32>
    %21 = math.exp %20 : vector<2x1xf32>
    %22 = arith.subf %12, %15 : vector<2x1xf32>
    %23 = math.exp %22 : vector<2x1xf32>
    %24 = arith.addf %17, %19 : vector<2x1xf32>
    %25 = arith.addf %24, %21 : vector<2x1xf32>
    %26 = arith.addf %25, %23 : vector<2x1xf32>
    %27 = tpu.reciprocal %26 {approx = true} : vector<2x1xf32> -> vector<2x1xf32>
    %28 = arith.mulf %17, %27 : vector<2x1xf32>
    %29 = vector.broadcast %28 : vector<2x1xf32> to vector<2x32xf32>
    %30 = arith.mulf %29, %2 : vector<2x32xf32>
    %31 = arith.mulf %19, %27 : vector<2x1xf32>
    %32 = vector.broadcast %31 : vector<2x1xf32> to vector<2x32xf32>
    %33 = arith.mulf %32, %4 : vector<2x32xf32>
    %34 = arith.addf %30, %33 : vector<2x32xf32>
    %35 = arith.mulf %21, %27 : vector<2x1xf32>
    %36 = vector.broadcast %35 : vector<2x1xf32> to vector<2x32xf32>
    %37 = arith.mulf %36, %6 : vector<2x32xf32>
    %38 = arith.addf %34, %37 : vector<2x32xf32>
    %39 = arith.mulf %23, %27 : vector<2x1xf32>
    %40 = vector.broadcast %39 : vector<2x1xf32> to vector<2x32xf32>
    %41 = arith.mulf %40, %8 : vector<2x32xf32>
    %42 = arith.addf %38, %41 : vector<2x32xf32>
    %c0_13 = arith.constant 0 : index
    %c0_14 = arith.constant 0 : index
    %43 = vector.load %arg3[%c0_13, %c0_14] : memref<32x128xf32, #tpu.memory_space<vmem>>, vector<32x128xf32>
    %cst_15 = arith.constant dense<0.000000e+00> : vector<2x128xf32>
    %44 = tpu.matmul %42, %43, %cst_15 {dimension_numbers = #tpu.dot_dimension_numbers<[1], [0], [0], [1], [0, 0, 1, 1], [], []>} : vector<2x32xf32>, vector<32x128xf32>, vector<2x128xf32> -> vector<2x128xf32>
    %c0_16 = arith.constant 0 : index
    %c0_17 = arith.constant 0 : index
    %45 = vector.load %arg4[%c0_16, %c0_17] : memref<2x128xf32, #tpu.memory_space<vmem>>, vector<2x128xf32>
    tpu.vector_store %arg4[%c0_16, %c0_17], %44 {strides = array<i32>} : memref<2x128xf32, #tpu.memory_space<vmem>>, vector<2x128xf32>,
    return
  }
  func.func @transform_0(%arg0: i32) -> (i32, i32, i32) {
    %c0_i32 = arith.constant 0 : i32
    %c0_i32_0 = arith.constant 0 : i32
    %c0_i32_1 = arith.constant 0 : i32
    return %c0_i32, %arg0, %c0_i32_0 : i32, i32, i32
  }
  func.func @transform_1(%arg0: i32) -> (i32, i32) {
    %c0_i32 = arith.constant 0 : i32
    %c0_i32_0 = arith.constant 0 : i32
    %c0_i32_1 = arith.constant 0 : i32
    return %c0_i32, %c0_i32_0 : i32, i32
  }
  func.func @transform_2(%arg0: i32) -> (i32, i32) {
    %c0_i32 = arith.constant 0 : i32
    %c0_i32_0 = arith.constant 0 : i32
    %c0_i32_1 = arith.constant 0 : i32
    return %c0_i32, %c0_i32_0 : i32, i32
  }
  func.func @transform_3(%arg0: i32) -> (i32, i32) {
    %c0_i32 = arith.constant 0 : i32
    %c0_i32_0 = arith.constant 0 : i32
    return %arg0, %c0_i32 : i32, i32
  }
}

module attributes {stable_mosaic.version = 11 : i64} {
  func.func @_attn_pool_lbh_kernel(%arg0: i32, %arg1: memref<4x2x32xf32, #tpu.memory_space<vmem>>, %arg2: memref<1x32xf32, #tpu.memory_space<vmem>>, %arg3: memref<32x128xf32, #tpu.memory_space<vmem>>, %arg4: memref<2x128xf32, #tpu.memory_space<vmem>>) attributes {dimension_semantics = [#tpu.dimension_semantics<parallel>], iteration_bounds = array<i64: 1>, scalar_prefetch = 0 : i64, scratch_operands = 0 : i64, tpu.core_type = #tpu.core_type<tc>, window_params = [{transform_indices = @transform_0, window_bounds = array<i64: 4, 2, 32>}, {pipeline_mode = #tpu.pipeline_mode<synchronous>, transform_indices = @transform_1, window_bounds = array<i64: 1, 32>}, {pipeline_mode = #tpu.pipeline_mode<synchronous>, transform_indices = @transform_2, window_bounds = array<i64: 32, 128>}, {transform_indices = @transform_3, window_bounds = array<i64: 2, 128>}]} {
    %c0 = arith.constant 0 : index
    %c0_0 = arith.constant 0 : index
    %0 = vector.load %arg2[%c0, %c0_0] : memref<1x32xf32, #tpu.memory_space<vmem>>, vector<1x32xf32>
    %c0_1 = arith.constant 0 : index
    %c0_2 = arith.constant 0 : index
    %c0_3 = arith.constant 0 : index
    %1 = vector.load %arg1[%c0_1, %c0_2, %c0_3] : memref<4x2x32xf32, #tpu.memory_space<vmem>>, vector<1x2x32xf32>
    %2 = vector.shape_cast %1 : vector<1x2x32xf32> to vector<2x32xf32>
    %c1 = arith.constant 1 : index
    %c0_4 = arith.constant 0 : index
    %c0_5 = arith.constant 0 : index
    %3 = vector.load %arg1[%c1, %c0_4, %c0_5] : memref<4x2x32xf32, #tpu.memory_space<vmem>>, vector<1x2x32xf32>
    %4 = vector.shape_cast %3 : vector<1x2x32xf32> to vector<2x32xf32>
    %c2 = arith.constant 2 : index
    %c0_6 = arith.constant 0 : index
    %c0_7 = arith.constant 0 : index
    %5 = vector.load %arg1[%c2, %c0_6, %c0_7] : memref<4x2x32xf32, #tpu.memory_space<vmem>>, vector<1x2x32xf32>
    %6 = vector.shape_cast %5 : vector<1x2x32xf32> to vector<2x32xf32>
    %c3 = arith.constant 3 : index
    %c0_8 = arith.constant 0 : index
    %c0_9 = arith.constant 0 : index
    %7 = vector.load %arg1[%c3, %c0_8, %c0_9] : memref<4x2x32xf32, #tpu.memory_space<vmem>>, vector<1x2x32xf32>
    %8 = vector.shape_cast %7 : vector<1x2x32xf32> to vector<2x32xf32>
    %cst = arith.constant dense<0.000000e+00> : vector<2x1xf32>
    %9 = tpu.matmul %2, %0, %cst {dimension_numbers = #tpu.dot_dimension_numbers<[1], [1], [0], [0], [0, 0, 1, 0], [], []>} : vector<2x32xf32>, vector<1x32xf32>, vector<2x1xf32> -> vector<2x1xf32>
    %cst_10 = arith.constant dense<0.000000e+00> : vector<2x1xf32>
    %10 = tpu.matmul %4, %0, %cst_10 {dimension_numbers = #tpu.dot_dimension_numbers<[1], [1], [0], [0], [0, 0, 1, 0], [], []>} : vector<2x32xf32>, vector<1x32xf32>, vector<2x1xf32> -> vector<2x1xf32>
    %cst_11 = arith.constant dense<0.000000e+00> : vector<2x1xf32>
    %11 = tpu.matmul %6, %0, %cst_11 {dimension_numbers = #tpu.dot_dimension_numbers<[1], [1], [0], [0], [0, 0, 1, 0], [], []>} : vector<2x32xf32>, vector<1x32xf32>, vector<2x1xf32> -> vector<2x1xf32>
    %cst_12 = arith.constant dense<0.000000e+00> : vector<2x1xf32>
    %12 = tpu.matmul %8, %0, %cst_12 {dimension_numbers = #tpu.dot_dimension_numbers<[1], [1], [0], [0], [0, 0, 1, 0], [], []>} : vector<2x32xf32>, vector<1x32xf32>, vector<2x1xf32> -> vector<2x1xf32>
    %13 = arith.maximumf %9, %10 : vector<2x1xf32>
    %14 = arith.maximumf %13, %11 : vector<2x1xf32>
    %15 = arith.maximumf %14, %12 : vector<2x1xf32>
    %16 = arith.subf %9, %15 : vector<2x1xf32>
    %17 = math.exp %16 : vector<2x1xf32>
    %18 = arith.subf %10, %15 : vector<2x1xf32>
    %19 = math.exp %18 : vector<2x1xf32>
    %20 = arith.subf %11, %15 : vector<2x1xf32>
    %21 = math.exp %20 : vector<2x1xf32>
    %22 = arith.subf %12, %15 : vector<2x1xf32>
    %23 = math.exp %22 : vector<2x1xf32>
    %24 = arith.addf %17, %19 : vector<2x1xf32>
    %25 = arith.addf %24, %21 : vector<2x1xf32>
    %26 = arith.addf %25, %23 : vector<2x1xf32>
    %27 = tpu.reciprocal %26 {approx = true} : vector<2x1xf32> -> vector<2x1xf32>
    %28 = arith.mulf %17, %27 : vector<2x1xf32>
    %29 = vector.broadcast %28 : vector<2x1xf32> to vector<2x32xf32>
    %30 = arith.mulf %29, %2 : vector<2x32xf32>
    %31 = arith.mulf %19, %27 : vector<2x1xf32>
    %32 = vector.broadcast %31 : vector<2x1xf32> to vector<2x32xf32>
    %33 = arith.mulf %32, %4 : vector<2x32xf32>
    %34 = arith.addf %30, %33 : vector<2x32xf32>
    %35 = arith.mulf %21, %27 : vector<2x1xf32>
    %36 = vector.broadcast %35 : vector<2x1xf32> to vector<2x32xf32>
    %37 = arith.mulf %36, %6 : vector<2x32xf32>
    %38 = arith.addf %34, %37 : vector<2x32xf32>
    %39 = arith.mulf %23, %27 : vector<2x1xf32>
    %40 = vector.broadcast %39 : vector<2x1xf32> to vector<2x32xf32>
    %41 = arith.mulf %40, %8 : vector<2x32xf32>
    %42 = arith.addf %38, %41 : vector<2x32xf32>
    %c0_13 = arith.constant 0 : index
    %c0_14 = arith.constant 0 : index
    %43 = vector.load %arg3[%c0_13, %c0_14] : memref<32x128xf32, #tpu.memory_space<vmem>>, vector<32x128xf32>
    %cst_15 = arith.constant dense<0.000000e+00> : vector<2x128xf32>
    %44 = tpu.matmul %42, %43, %cst_15 {dimension_numbers = #tpu.dot_dimension_numbers<[1], [0], [0], [1], [0, 0, 1, 1], [], []>} : vector<2x32xf32>, vector<32x128xf32>, vector<2x128xf32> -> vector<2x128xf32>
    %c0_16 = arith.constant 0 : index
    %c0_17 = arith.constant 0 : index
    %45 = vector.load %arg4[%c0_16, %c0_17] : memref<2x128xf32, #tpu.memory_space<vmem>>, vector<2x128xf32>
    tpu.vector_store %arg4[%c0_16, %c0_17], %44 {strides = array<i32>} : memref<2x128xf32, #tpu.memory_space<vmem>>, vector<2x128xf32>,
    return
  }
  func.func @transform_0(%arg0: i32) -> (i32, i32, i32) {
    %c0_i32 = arith.constant 0 : i32
    %c0_i32_0 = arith.constant 0 : i32
    %c0_i32_1 = arith.constant 0 : i32
    return %c0_i32, %arg0, %c0_i32_0 : i32, i32, i32
  }
  func.func @transform_1(%arg0: i32) -> (i32, i32) {
    %c0_i32 = arith.constant 0 : i32
    %c0_i32_0 = arith.constant 0 : i32
    %c0_i32_1 = arith.constant 0 : i32
    return %c0_i32, %c0_i32_0 : i32, i32
  }
  func.func @transform_2(%arg0: i32) -> (i32, i32) {
    %c0_i32 = arith.constant 0 : i32
    %c0_i32_0 = arith.constant 0 : i32
    %c0_i32_1 = arith.constant 0 : i32
    return %c0_i32, %c0_i32_0 : i32, i32
  }
  func.func @transform_3(%arg0: i32) -> (i32, i32) {
    %c0_i32 = arith.constant 0 : i32
    %c0_i32_0 = arith.constant 0 : i32
    return %arg0, %c0_i32 : i32, i32
  }
}

</mosaic_0001>

<bundles_post_ra>
// kernel: tpu_custom_call.1
= control target key start
LH: loop header
LB: loop body
LE: loop exit
PB: predicated region body
PF: predicated region fallthrough
CT: control target
= control target key end

     0   :  { %8 = vsyncpa [#allocation3], 0  ;;  %s351_s0 = inlined_call_operand.hbm [shape: f32[4,2,32], index: 0, kind: input, shape index: {}]   ;;  %s352_s1 = inlined_call_operand.vmem [shape: f32[1,32], index: 1, kind: input, shape index: {}]   ;;  %s353_s2 = inlined_call_operand.hbm [shape: f32[32,128], index: 2, kind: input, shape index: {}]   ;;  %s354_s3 = inlined_call_operand.hbm [shape: f32[2,128], index: 3, kind: output, shape index: {}]  }
   0x1   :  { %9 = vsyncpa [#allocation6], 0 }
   0x2   :  { %10 = vsyncpa [#allocation4], 0  ;;  %s302_s12 = smov [#allocation2]  }
   0x3   :  { %s16_s13 = sshll.u32 %s302_s12, 4  ;;  %s17_s13 = int_to_ptr.vmem [resolvable:$true] %s16_s13 }
   0x4   :  { %s244_s14 = scalar_lea.vmem %s17_s13, 128  ;;  %p249_p1 = scmp.lt.s32.totalorder %s17_s13, %s17_s13 }
   0x5   :  { %p245_p0 = scmp.ne.s32.totalorder %s17_s13, %s244_s14  ;;  %p250_p2 = scmp.lt.s32.totalorder %s244_s14, %s244_s14 }
   0x7   :  { %p251_p3 = por %p250_p2, %p249_p1 }
   0x9   :  { %p252_p4 = pnand %p251_p3, %p245_p0 }
   0xb   :  { %255 = shalt.err (!%p252_p4)
}
   0xc   :  { %s303_s15 = smov 32   ;;  %s304_s16 = smov 2  }
   0xd   :  { %22 = dma.hbm_to_vmem [thread:$0]  %s351_s0, 128, %s17_s13, [#allocation3], %s303_s15, %s303_s15, %s304_s16  }
   0xe   :  { %s305_s19 = smov [#allocation5]  }
   0xf   :  { %s30_s20 = sshll.u32 %s305_s19, 4  ;;  %s31_s20 = int_to_ptr.vmem [resolvable:$true] %s30_s20 }
  0x10   :  { %s264_s21 = scalar_lea.vmem %s31_s20, 512  ;;  %p269_p6 = scmp.lt.s32.totalorder %s31_s20, %s31_s20 }
  0x11   :  { %p265_p5 = scmp.ne.s32.totalorder %s31_s20, %s264_s21  ;;  %p270_p7 = scmp.lt.s32.totalorder %s264_s21, %s264_s21 }
  0x13   :  { %p271_p8 = por %p270_p7, %p269_p6 }
  0x15   :  { %p272_p9 = pnand %p271_p8, %p265_p5 }
  0x17   :  { %275 = shalt.err (!%p272_p9)
}
  0x18   :  { %s306_s22 = smov 128   ;;  %s307_s23 = smov 8  }
  0x19   :  { %36 = dma.hbm_to_vmem [thread:$0]  %s353_s2, 512, %s31_s20, [#allocation6], %s306_s22, %s306_s22, %s307_s23  }
  0x1a   :  { %296 = dma.done.wait [#allocation3], 128  }
  0x1b   :  { %297 = vsyncadd [#allocation3], 4294967168 }
  0x1c   :  { %298 = dma.done.wait [#allocation6], 512  }
  0x1d   :  { %299 = vsyncadd [#allocation6], 4294966784  ;;  %vm58_vm0 = vcmask 254976   ;;  %v199_v0 = vld [vmem:[%s352_s1] ss:$0 sm:$0xff]  ;;  %v308_v14 = vmov 0.0  }
  0x1e   :  { %v44_v1 = vld [vmem:[#allocation2] sm:$0x3]  ;;  %v340_v2 = vld [vmem:[#allocation2 + $0x4] sm:$0x3]  ;;  %v46_v5 = vld [vmem:[#allocation2 + $0x2] sm:$0x3]  ;;  %206 = vmatprep.subr.mxu0 %v308_v14 }
  0x1f   :  { %v57_v3 = vmul.f32 %v199_v0, %v44_v1  ;;  %v66_v4 = vmul.f32 %v199_v0, %v340_v2  ;;  %v343_v6 = vld [vmem:[#allocation2 + $0x6] sm:$0x3]  ;;  %v62_v7 = vmul.f32 %v199_v0, %v46_v5  ;;  %v106_v15 = vld [vmem:[#allocation5 + $0x10] sm:$0xff]  ;;  %vm309_vm1 = vmmov 0   ;;  %v105_v16 = vld [vmem:[#allocation5 + $0x8] sm:$0xff]  ;;  %s310_s1 = smov [#allocation7]  }
  0x20   :  { %v70_v8 = vmul.f32 %v199_v0, %v343_v6  ;;  %v107_v13 = vld [vmem:[#allocation5 + $0x18] sm:$0xff]  ;;  %214 = vmatprep.mubr.msk.f32.mxu0 %vm309_vm1, %v308_v14  ;;  %v104_v17 = vld [vmem:[#allocation5] sm:$0xff]  ;;  %vm108_vm2 = vcmask 261120   ;;  %s189_s2 = sshll.u32 %s310_s1, 4  ;;  %s190_s2 = int_to_ptr.vmem [resolvable:$true] %s189_s2 }
  0x21   :  { %v59_v9 = vsel %vm58_vm0, %v57_v3, 0.0  ;;  %v67_v10 = vsel %vm58_vm0, %v66_v4, 0.0  ;;  %v63_v11 = vsel %vm58_vm0, %v62_v7, 0.0  ;;  %207 = vmatpush3.msra.mxu0 %v107_v13  ;;  %s276_s27 = scalar_lea.vmem %s190_s2, 32  ;;  %p281_p11 = scmp.lt.s32.totalorder %s190_s2, %s190_s2 }
  0x22   :  { %60 = vadd.xlane.f32.xlu0 %v59_v9  ;;  %68 = vadd.xlane.f32.xlu1 %v67_v10  ;;  %v71_v12 = vsel %vm58_vm0, %v70_v8, 0.0  ;;  %p277_p10 = scmp.ne.s32.totalorder %s190_s2, %s276_s27  ;;  %p282_p12 = scmp.lt.s32.totalorder %s276_s27, %s276_s27 }
  0x23   :  { %208 = vmatprep.subr.mxu0 %v308_v14 }
  0x24   :  { %209 = vmatpush3.msra.mxu0 %v106_v15  ;;  %p283_p13 = por %p282_p12, %p281_p11 }
  0x25   :  { %210 = vmatprep.subr.mxu0 %v308_v14 }
  0x26   :  { %64 = vadd.xlane.f32.xlu0 %v63_v11  ;;  %72 = vadd.xlane.f32.xlu1 %v71_v12  ;;  %p284_p0 = pnand %p283_p13, %p277_p10 }
  0x27   :  { %211 = vmatpush3.msra.mxu0 %v105_v16 }
  0x28   :  { %212 = vmatprep.subr.mxu0 %v308_v14 }
  0x29   :  { %213 = vmatpush3.msra.mxu0 %v104_v17 }
  0xab   :  { %v61_v18 = vpop.xlane.xlu0 %60  ;;  %v69_v19 = vpop.xlane.xlu1 %68 }
  0xaf   :  { %v65_v20 = vpop.xlane.xlu0 %64  ;;  %v73_v22 = vpop.xlane.xlu1 %72 }
  0xb0   :  { %v74_v21 = vmax.f32 %v61_v18, %v65_v20 }
  0xb2   :  { %v75_v23 = vmax.f32 %v74_v21, %v69_v19 }
  0xb4   :  { %v76_v24 = vmax.f32 %v75_v23, %v73_v22 }
  0xb6   :  { %v77_v25 = vsub.f32 %v61_v18, %v76_v24  ;;  %v80_v26 = vsub.f32 %v65_v20, %v76_v24  ;;  %v83_v27 = vsub.f32 %v69_v19, %v76_v24  ;;  %v86_v28 = vsub.f32 %v73_v22, %v76_v24 }
  0xb8   :  { %v78_v29 = vmul.f32 1.442695, %v77_v25  ;;  %v81_v30 = vmul.f32 1.442695, %v80_v26  ;;  %v84_v31 = vmul.f32 1.442695, %v83_v27 }
  0xb9   :  { %v87_v32 = vmul.f32 1.442695, %v86_v28 }
  0xba   :  { %226 = vpow2.f32 %v78_v29 }
  0xbb   :  { %228 = vpow2.f32 %v81_v30 }
  0xbc   :  { %230 = vpow2.f32 %v84_v31 }
  0xbd   :  { %232 = vpow2.f32 %v87_v32 }
  0xc7   :  { %v227_v33 = vpop.eup %226 }
  0xc8   :  { %v229_v34 = vpop.eup %228 }
  0xc9   :  { %v89_v35 = vadd.f32 %v229_v34, %v227_v33  ;;  %v231_v36 = vpop.eup %230 }
  0xca   :  { %v233_v38 = vpop.eup %232 }
  0xcb   :  { %v90_v37 = vadd.f32 %v231_v36, %v89_v35 }
  0xcd   :  { %v91_v39 = vadd.f32 %v233_v38, %v90_v37 }
  0xcf   :  { %234 = vrcp.f32 %v91_v39 }
  0xdc   :  { %v235_v40 = vpop.eup %234 }
  0xdd   :  { %v93_v41 = vmul.f32 %v235_v40, %v227_v33  ;;  %v95_v42 = vmul.f32 %v235_v40, %v229_v34  ;;  %v98_v43 = vmul.f32 %v235_v40, %v231_v36  ;;  %v101_v46 = vmul.f32 %v235_v40, %v233_v38 }
  0xdf   :  { %v94_v44 = vmul.f32 %v93_v41, %v44_v1  ;;  %v96_v45 = vmul.f32 %v95_v42, %v46_v5  ;;  %v99_v48 = vmul.f32 %v98_v43, %v340_v2  ;;  %v102_v50 = vmul.f32 %v101_v46, %v343_v6 }
  0xe1   :  { %v97_v47 = vadd.f32 %v96_v45, %v94_v44 }
  0xe3   :  { %v100_v49 = vadd.f32 %v99_v48, %v97_v47 }
  0xe5   :  { %v103_v51 = vadd.f32 %v102_v50, %v100_v49 }
  0xe7   :  { %215 = vmatmul.mubr.msk.f32.vlgmr.msra.gmra.mxu0 %vm108_vm2, %v103_v51 }
 0x1a7   :  { %v178_v52 = vpop.f32.mrf.mxu0 }
 0x1a8   :  { %182 = vst [vmem:[#allocation7] sm:$0x3] %v178_v52 }
 0x1a9   :  { %v216_v53 = vpop.f32.mrf.mxu0 }
 0x1aa   :  { %287 = shalt.err (!%p284_p0)
}
 0x1ab   :  { %192 = dma.vmem_to_hbm [thread:$0]  %s190_s2, 32, %s354_s3, [#allocation4]  }
 0x1ac   :  { %300 = dma.done.wait [#allocation4], 32  }
 0x1ad   :  { %301 = vsyncadd [#allocation4], 4294967264 }
 0x1ae   :  { %196 = vsyncpa [#allocation3], 1 }
 0x1af   :  { %197 = vsyncpa [#allocation6], 1 }
 0x1b0   :  { %198 = vsyncpa [#allocation4], 1 }

// kernel: tpu_custom_call.1
= control target key start
LH: loop header
LB: loop body
LE: loop exit
PB: predicated region body
PF: predicated region fallthrough
CT: control target
= control target key end

     0   :  { %8 = vsyncpa [#allocation3], 0  ;;  %s351_s0 = inlined_call_operand.hbm [shape: f32[4,2,32], index: 0, kind: input, shape index: {}]   ;;  %s352_s1 = inlined_call_operand.vmem [shape: f32[1,32], index: 1, kind: input, shape index: {}]   ;;  %s353_s2 = inlined_call_operand.hbm [shape: f32[32,128], index: 2, kind: input, shape index: {}]   ;;  %s354_s3 = inlined_call_operand.hbm [shape: f32[2,128], index: 3, kind: output, shape index: {}]  }
   0x1   :  { %9 = vsyncpa [#allocation6], 0 }
   0x2   :  { %10 = vsyncpa [#allocation4], 0  ;;  %s302_s12 = smov [#allocation2]  }
   0x3   :  { %s16_s13 = sshll.u32 %s302_s12, 4  ;;  %s17_s13 = int_to_ptr.vmem [resolvable:$true] %s16_s13 }
   0x4   :  { %s244_s14 = scalar_lea.vmem %s17_s13, 128  ;;  %p249_p1 = scmp.lt.s32.totalorder %s17_s13, %s17_s13 }
   0x5   :  { %p245_p0 = scmp.ne.s32.totalorder %s17_s13, %s244_s14  ;;  %p250_p2 = scmp.lt.s32.totalorder %s244_s14, %s244_s14 }
   0x7   :  { %p251_p3 = por %p250_p2, %p249_p1 }
   0x9   :  { %p252_p4 = pnand %p251_p3, %p245_p0 }
   0xb   :  { %255 = shalt.err (!%p252_p4)
}
   0xc   :  { %s303_s15 = smov 32   ;;  %s304_s16 = smov 2  }
   0xd   :  { %22 = dma.hbm_to_vmem [thread:$0]  %s351_s0, 128, %s17_s13, [#allocation3], %s303_s15, %s303_s15, %s304_s16  }
   0xe   :  { %s305_s19 = smov [#allocation5]  }
   0xf   :  { %s30_s20 = sshll.u32 %s305_s19, 4  ;;  %s31_s20 = int_to_ptr.vmem [resolvable:$true] %s30_s20 }
  0x10   :  { %s264_s21 = scalar_lea.vmem %s31_s20, 512  ;;  %p269_p6 = scmp.lt.s32.totalorder %s31_s20, %s31_s20 }
  0x11   :  { %p265_p5 = scmp.ne.s32.totalorder %s31_s20, %s264_s21  ;;  %p270_p7 = scmp.lt.s32.totalorder %s264_s21, %s264_s21 }
  0x13   :  { %p271_p8 = por %p270_p7, %p269_p6 }
  0x15   :  { %p272_p9 = pnand %p271_p8, %p265_p5 }
  0x17   :  { %275 = shalt.err (!%p272_p9)
}
  0x18   :  { %s306_s22 = smov 128   ;;  %s307_s23 = smov 8  }
  0x19   :  { %36 = dma.hbm_to_vmem [thread:$0]  %s353_s2, 512, %s31_s20, [#allocation6], %s306_s22, %s306_s22, %s307_s23  }
  0x1a   :  { %296 = dma.done.wait [#allocation3], 128  }
  0x1b   :  { %297 = vsyncadd [#allocation3], 4294967168 }
  0x1c   :  { %298 = dma.done.wait [#allocation6], 512  }
  0x1d   :  { %299 = vsyncadd [#allocation6], 4294966784  ;;  %vm58_vm0 = vcmask 254976   ;;  %v199_v0 = vld [vmem:[%s352_s1] ss:$0 sm:$0xff]  ;;  %v308_v14 = vmov 0.0  }
  0x1e   :  { %v44_v1 = vld [vmem:[#allocation2] sm:$0x3]  ;;  %v340_v2 = vld [vmem:[#allocation2 + $0x4] sm:$0x3]  ;;  %v46_v5 = vld [vmem:[#allocation2 + $0x2] sm:$0x3]  ;;  %206 = vmatprep.subr.mxu0 %v308_v14 }
  0x1f   :  { %v57_v3 = vmul.f32 %v199_v0, %v44_v1  ;;  %v66_v4 = vmul.f32 %v199_v0, %v340_v2  ;;  %v343_v6 = vld [vmem:[#allocation2 + $0x6] sm:$0x3]  ;;  %v62_v7 = vmul.f32 %v199_v0, %v46_v5  ;;  %v106_v15 = vld [vmem:[#allocation5 + $0x10] sm:$0xff]  ;;  %vm309_vm1 = vmmov 0   ;;  %v105_v16 = vld [vmem:[#allocation5 + $0x8] sm:$0xff]  ;;  %s310_s1 = smov [#allocation7]  }
  0x20   :  { %v70_v8 = vmul.f32 %v199_v0, %v343_v6  ;;  %v107_v13 = vld [vmem:[#allocation5 + $0x18] sm:$0xff]  ;;  %214 = vmatprep.mubr.msk.f32.mxu0 %vm309_vm1, %v308_v14  ;;  %v104_v17 = vld [vmem:[#allocation5] sm:$0xff]  ;;  %vm108_vm2 = vcmask 261120   ;;  %s189_s2 = sshll.u32 %s310_s1, 4  ;;  %s190_s2 = int_to_ptr.vmem [resolvable:$true] %s189_s2 }
  0x21   :  { %v59_v9 = vsel %vm58_vm0, %v57_v3, 0.0  ;;  %v67_v10 = vsel %vm58_vm0, %v66_v4, 0.0  ;;  %v63_v11 = vsel %vm58_vm0, %v62_v7, 0.0  ;;  %207 = vmatpush3.msra.mxu0 %v107_v13  ;;  %s276_s27 = scalar_lea.vmem %s190_s2, 32  ;;  %p281_p11 = scmp.lt.s32.totalorder %s190_s2, %s190_s2 }
  0x22   :  { %60 = vadd.xlane.f32.xlu0 %v59_v9  ;;  %68 = vadd.xlane.f32.xlu1 %v67_v10  ;;  %v71_v12 = vsel %vm58_vm0, %v70_v8, 0.0  ;;  %p277_p10 = scmp.ne.s32.totalorder %s190_s2, %s276_s27  ;;  %p282_p12 = scmp.lt.s32.totalorder %s276_s27, %s276_s27 }
  0x23   :  { %208 = vmatprep.subr.mxu0 %v308_v14 }
  0x24   :  { %209 = vmatpush3.msra.mxu0 %v106_v15  ;;  %p283_p13 = por %p282_p12, %p281_p11 }
  0x25   :  { %210 = vmatprep.subr.mxu0 %v308_v14 }
  0x26   :  { %64 = vadd.xlane.f32.xlu0 %v63_v11  ;;  %72 = vadd.xlane.f32.xlu1 %v71_v12  ;;  %p284_p0 = pnand %p283_p13, %p277_p10 }
  0x27   :  { %211 = vmatpush3.msra.mxu0 %v105_v16 }
  0x28   :  { %212 = vmatprep.subr.mxu0 %v308_v14 }
  0x29   :  { %213 = vmatpush3.msra.mxu0 %v104_v17 }
  0xab   :  { %v61_v18 = vpop.xlane.xlu0 %60  ;;  %v69_v19 = vpop.xlane.xlu1 %68 }
  0xaf   :  { %v65_v20 = vpop.xlane.xlu0 %64  ;;  %v73_v22 = vpop.xlane.xlu1 %72 }
  0xb0   :  { %v74_v21 = vmax.f32 %v61_v18, %v65_v20 }
  0xb2   :  { %v75_v23 = vmax.f32 %v74_v21, %v69_v19 }
  0xb4   :  { %v76_v24 = vmax.f32 %v75_v23, %v73_v22 }
  0xb6   :  { %v77_v25 = vsub.f32 %v61_v18, %v76_v24  ;;  %v80_v26 = vsub.f32 %v65_v20, %v76_v24  ;;  %v83_v27 = vsub.f32 %v69_v19, %v76_v24  ;;  %v86_v28 = vsub.f32 %v73_v22, %v76_v24 }
  0xb8   :  { %v78_v29 = vmul.f32 1.442695, %v77_v25  ;;  %v81_v30 = vmul.f32 1.442695, %v80_v26  ;;  %v84_v31 = vmul.f32 1.442695, %v83_v27 }
  0xb9   :  { %v87_v32 = vmul.f32 1.442695, %v86_v28 }
  0xba   :  { %226 = vpow2.f32 %v78_v29 }
  0xbb   :  { %228 = vpow2.f32 %v81_v30 }
  0xbc   :  { %230 = vpow2.f32 %v84_v31 }
  0xbd   :  { %232 = vpow2.f32 %v87_v32 }
  0xc7   :  { %v227_v33 = vpop.eup %226 }
  0xc8   :  { %v229_v34 = vpop.eup %228 }
  0xc9   :  { %v89_v35 = vadd.f32 %v229_v34, %v227_v33  ;;  %v231_v36 = vpop.eup %230 }
  0xca   :  { %v233_v38 = vpop.eup %232 }
  0xcb   :  { %v90_v37 = vadd.f32 %v231_v36, %v89_v35 }
  0xcd   :  { %v91_v39 = vadd.f32 %v233_v38, %v90_v37 }
  0xcf   :  { %234 = vrcp.f32 %v91_v39 }
  0xdc   :  { %v235_v40 = vpop.eup %234 }
  0xdd   :  { %v93_v41 = vmul.f32 %v235_v40, %v227_v33  ;;  %v95_v42 = vmul.f32 %v235_v40, %v229_v34  ;;  %v98_v43 = vmul.f32 %v235_v40, %v231_v36  ;;  %v101_v46 = vmul.f32 %v235_v40, %v233_v38 }
  0xdf   :  { %v94_v44 = vmul.f32 %v93_v41, %v44_v1  ;;  %v96_v45 = vmul.f32 %v95_v42, %v46_v5  ;;  %v99_v48 = vmul.f32 %v98_v43, %v340_v2  ;;  %v102_v50 = vmul.f32 %v101_v46, %v343_v6 }
  0xe1   :  { %v97_v47 = vadd.f32 %v96_v45, %v94_v44 }
  0xe3   :  { %v100_v49 = vadd.f32 %v99_v48, %v97_v47 }
  0xe5   :  { %v103_v51 = vadd.f32 %v102_v50, %v100_v49 }
  0xe7   :  { %215 = vmatmul.mubr.msk.f32.vlgmr.msra.gmra.mxu0 %vm108_vm2, %v103_v51 }
 0x1a7   :  { %v178_v52 = vpop.f32.mrf.mxu0 }
 0x1a8   :  { %182 = vst [vmem:[#allocation7] sm:$0x3] %v178_v52 }
 0x1a9   :  { %v216_v53 = vpop.f32.mrf.mxu0 }
 0x1aa   :  { %287 = shalt.err (!%p284_p0)
}
 0x1ab   :  { %192 = dma.vmem_to_hbm [thread:$0]  %s190_s2, 32, %s354_s3, [#allocation4]  }
 0x1ac   :  { %300 = dma.done.wait [#allocation4], 32  }
 0x1ad   :  { %301 = vsyncadd [#allocation4], 4294967264 }
 0x1ae   :  { %196 = vsyncpa [#allocation3], 1 }
 0x1af   :  { %197 = vsyncpa [#allocation6], 1 }
 0x1b0   :  { %198 = vsyncpa [#allocation4], 1 }

</bundles_post_ra>
